<compile_context>
chip_gen: v5e
topology: v5e:2x2
jax: 0.10.0
libtpu: 0.0.40
codegen_flags: <defaults>
</compile_context>

<pallas_src>
import functools
import math

import jax
import jax.numpy as jnp
from jax.experimental import pallas as pl
from jax.experimental.pallas import tpu as pltpu


_TARGET_BLOCK_BYTES = 2 * 1024 * 1024   # ~2 MiB per block
_VMEM_LIMIT_BYTES = 32 * 1024 * 1024    # safe on v5e/v6e/v7x


# ---------------------------------------------------------------- tile sizing

def _sublane_multiple(dtype) -> int:
    # Native packed tile height: 8 for 4-byte, 16 for 2-byte, 32 for 1-byte dtypes.
    return max(8, 32 // jnp.dtype(dtype).itemsize)


def _pick_sublane_tile(extent: int, bytes_per_row: int, dtype) -> int:
    """Tile along a sublane-mapped (second-minor) axis, targeting ~2 MiB/block."""
    mult = _sublane_multiple(dtype)
    t = max(1, _TARGET_BLOCK_BYTES // max(bytes_per_row, 1))
    t = max(mult, (t // mult) * mult)
    return extent if t >= extent else t     # full extent is always a legal block dim


def _pick_lane_tile(extent: int, bytes_per_lane: int) -> int:
    """Tile along the lane-mapped (last) axis in multiples of 128."""
    t = max(1, _TARGET_BLOCK_BYTES // max(bytes_per_lane, 1))
    t = max(128, (t // 128) * 128)
    return extent if t >= extent else t


# ---------------------------------------------------------------- kernels

def _ln_channels_last_kernel(x_ref, w_ref, b_ref, o_ref, *, eps):
    # x_ref: (TR, C); w_ref / b_ref: (1, C). Each row is independent.
    x = x_ref[...].astype(jnp.float32)
    u = jnp.mean(x, axis=-1, keepdims=True)
    d = x - u
    var = jnp.mean(d * d, axis=-1, keepdims=True)        # biased var (F.layer_norm)
    inv = jax.lax.rsqrt(var + eps)
    o_ref[...] = (d * inv * w_ref[...].astype(jnp.float32)
                  + b_ref[...].astype(jnp.float32)).astype(o_ref.dtype)


def _ln_channels_first_kernel(x_ref, w_ref, b_ref, o_ref, *, eps):
    # x_ref: (1, C, T); w_ref / b_ref: (1, C, 1). Reduction over the full-extent
    # channel (sublane) axis; each lane (spatial position) is independent.
    x = x_ref[...].astype(jnp.float32)
    u = jnp.mean(x, axis=1, keepdims=True)
    d = x - u
    var = jnp.mean(d * d, axis=1, keepdims=True)
    inv = jax.lax.rsqrt(var + eps)
    o_ref[...] = (d * inv * w_ref[...].astype(jnp.float32)
                  + b_ref[...].astype(jnp.float32)).astype(o_ref.dtype)


# ---------------------------------------------------------------- wrappers

@functools.partial(jax.jit, static_argnames=("eps",))
def layer_norm_channels_last(x, weight, bias, eps):
    C = x.shape[-1]
    rows = math.prod(x.shape[:-1]) if x.ndim > 1 else 1
    x2 = x.reshape(rows, C)

    itemsize = jnp.dtype(x.dtype).itemsize
    tr = _pick_sublane_tile(rows, C * itemsize, x.dtype)

    out = pl.pallas_call(
        functools.partial(_ln_channels_last_kernel, eps=eps),
        out_shape=jax.ShapeDtypeStruct((rows, C), x.dtype),
        grid=(pl.cdiv(rows, tr),),
        in_specs=[
            pl.BlockSpec((tr, C), lambda i: (i, 0)),
            pl.BlockSpec((1, C), lambda i: (0, 0)),
            pl.BlockSpec((1, C), lambda i: (0, 0)),
        ],
        out_specs=pl.BlockSpec((tr, C), lambda i: (i, 0)),
        compiler_params=pltpu.CompilerParams(
            dimension_semantics=("parallel",),
            vmem_limit_bytes=_VMEM_LIMIT_BYTES,
        ),
    )(x2, weight.reshape(1, C), bias.reshape(1, C))
    return out.reshape(x.shape)


@functools.partial(jax.jit, static_argnames=("eps",))
def layer_norm_channels_first(x, weight, bias, eps):
    N, C = x.shape[0], x.shape[1]
    HW = math.prod(x.shape[2:]) if x.ndim > 2 else 1
    x3 = x.reshape(N, C, HW)

    itemsize = jnp.dtype(x.dtype).itemsize
    thw = _pick_lane_tile(HW, C * itemsize)

    out = pl.pallas_call(
        functools.partial(_ln_channels_first_kernel, eps=eps),
        out_shape=jax.ShapeDtypeStruct((N, C, HW), x.dtype),
        grid=(N, pl.cdiv(HW, thw)),
        in_specs=[
            pl.BlockSpec((1, C, thw), lambda n, s: (n, 0, s)),
            pl.BlockSpec((1, C, 1), lambda n, s: (0, 0, 0)),
            pl.BlockSpec((1, C, 1), lambda n, s: (0, 0, 0)),
        ],
        out_specs=pl.BlockSpec((1, C, thw), lambda n, s: (n, 0, s)),
        compiler_params=pltpu.CompilerParams(
            dimension_semantics=("parallel", "parallel"),
            vmem_limit_bytes=_VMEM_LIMIT_BYTES,
        ),
    )(x3, weight.reshape(1, C, 1), bias.reshape(1, C, 1))
    return out.reshape(x.shape)


class LayerNorm:
    """JAX/Pallas port of the PyTorch LayerNorm module (multi_attention.py)."""

    def __init__(self, normalized_shape, eps=1e-6, data_format="channels_last"):
        self.weight = jnp.ones((normalized_shape,), jnp.float32)
        self.bias = jnp.zeros((normalized_shape,), jnp.float32)
        self.eps = eps
        self.data_format = data_format
        self.normalized_shape = (normalized_shape,)

    def __call__(self, x):
        if self.data_format == "channels_last":
            return layer_norm_channels_last(x, self.weight, self.bias, self.eps)
        elif self.data_format == "channels_first":
            return layer_norm_channels_first(x, self.weight, self.bias, self.eps)
        raise NotImplementedError(self.data_format)


# ---------------------------------------------------------------- reference (pure JAX)

def _ref_channels_last(x, w, b, eps):
    u = jnp.mean(x, axis=-1, keepdims=True)
    s = jnp.mean((x - u) ** 2, axis=-1, keepdims=True)
    return (x - u) / jnp.sqrt(s + eps) * w + b


def _ref_channels_first(x, w, b, eps):
    u = jnp.mean(x, axis=1, keepdims=True)
    s = jnp.mean((x - u) ** 2, axis=1, keepdims=True)
    xn = (x - u) / jnp.sqrt(s + eps)
    return w[:, None, None] * xn + b[:, None, None]


# ---------------------------------------------------------------- main

if __name__ == "__main__":
    key = jax.random.PRNGKey(0)
    k1, k2, k3, k4, k5, k6 = jax.random.split(key, 6)

    # --- channels_last: x (2, 8, 8, 32), normalized_shape = 32 ---
    C_last = 32
    x_last = jax.random.normal(k1, (2, 8, 8, C_last), jnp.float32)
    ln_last = LayerNorm(C_last, eps=1e-6, data_format="channels_last")
    ln_last.weight = 1.0 + 0.1 * jax.random.normal(k2, (C_last,), jnp.float32)
    ln_last.bias = 0.1 * jax.random.normal(k3, (C_last,), jnp.float32)

    out_last = jax.block_until_ready(ln_last(x_last))
    ref_last = _ref_channels_last(x_last, ln_last.weight, ln_last.bias, ln_last.eps)
    assert out_last.shape == x_last.shape and out_last.dtype == x_last.dtype
    assert jnp.allclose(out_last, ref_last, atol=1e-5, rtol=1e-5)

    # --- channels_first: x (2, 4, 16, 16) NCHW, normalized_shape = 4 ---
    C_first = 4
    x_first = jax.random.normal(k4, (2, C_first, 16, 16), jnp.float32)
    ln_first = LayerNorm(C_first, eps=1e-6, data_format="channels_first")
    ln_first.weight = 1.0 + 0.1 * jax.random.normal(k5, (C_first,), jnp.float32)
    ln_first.bias = 0.1 * jax.random.normal(k6, (C_first,), jnp.float32)

    out_first = jax.block_until_ready(ln_first(x_first))
    ref_first = _ref_channels_first(x_first, ln_first.weight, ln_first.bias, ln_first.eps)
    assert out_first.shape == x_first.shape and out_first.dtype == x_first.dtype
    assert jnp.allclose(out_first, ref_first, atol=1e-5, rtol=1e-5)

    print("KERNEL_OK")
</pallas_src>

<mosaic_0001>
module attributes {stable_mosaic.version = 11 : i64} {
  func.func @_ln_channels_last_kernel(%arg0: i32, %arg1: memref<128x32xf32, #tpu.memory_space<vmem>>, %arg2: memref<1x32xf32, #tpu.memory_space<vmem>>, %arg3: memref<1x32xf32, #tpu.memory_space<vmem>>, %arg4: memref<128x32xf32, #tpu.memory_space<vmem>>) attributes {dimension_semantics = [#tpu.dimension_semantics<parallel>], iteration_bounds = array<i64: 1>, scalar_prefetch = 0 : i64, scratch_operands = 0 : i64, tpu.core_type = #tpu.core_type<tc>, window_params = [{transform_indices = @transform_0, window_bounds = array<i64: 128, 32>}, {pipeline_mode = #tpu.pipeline_mode<synchronous>, transform_indices = @transform_1, window_bounds = array<i64: 1, 32>}, {pipeline_mode = #tpu.pipeline_mode<synchronous>, transform_indices = @transform_2, window_bounds = array<i64: 1, 32>}, {transform_indices = @transform_3, window_bounds = array<i64: 128, 32>}]} {
    %c0 = arith.constant 0 : index
    %c0_0 = arith.constant 0 : index
    %0 = vector.load %arg1[%c0, %c0_0] : memref<128x32xf32, #tpu.memory_space<vmem>>, vector<128x32xf32>
    %cst = arith.constant dense<0.000000e+00> : vector<128xf32>
    %1 = vector.multi_reduction <add>, %0, %cst [1] : vector<128x32xf32> to vector<128xf32>
    %2 = vector.shape_cast %1 : vector<128xf32> to vector<128x1xf32>
    %cst_1 = arith.constant 3.200000e+01 : f32
    %3 = vector.broadcast %cst_1 : f32 to vector<128x1xf32>
    %4 = arith.divf %2, %3 : vector<128x1xf32>
    %5 = vector.broadcast %4 : vector<128x1xf32> to vector<128x32xf32>
    %6 = arith.subf %0, %5 : vector<128x32xf32>
    %7 = arith.mulf %6, %6 : vector<128x32xf32>
    %cst_2 = arith.constant dense<0.000000e+00> : vector<128xf32>
    %8 = vector.multi_reduction <add>, %7, %cst_2 [1] : vector<128x32xf32> to vector<128xf32>
    %9 = vector.shape_cast %8 : vector<128xf32> to vector<128x1xf32>
    %cst_3 = arith.constant 3.200000e+01 : f32
    %10 = vector.broadcast %cst_3 : f32 to vector<128x1xf32>
    %11 = arith.divf %9, %10 : vector<128x1xf32>
    %cst_4 = arith.constant 9.99999997E-7 : f32
    %12 = vector.broadcast %cst_4 : f32 to vector<128x1xf32>
    %13 = arith.addf %11, %12 : vector<128x1xf32>
    %14 = math.rsqrt %13 : vector<128x1xf32>
    %15 = vector.broadcast %14 : vector<128x1xf32> to vector<128x32xf32>
    %16 = arith.mulf %6, %15 : vector<128x32xf32>
    %c0_5 = arith.constant 0 : index
    %c0_6 = arith.constant 0 : index
    %17 = vector.load %arg2[%c0_5, %c0_6] : memref<1x32xf32, #tpu.memory_space<vmem>>, vector<1x32xf32>
    %18 = vector.broadcast %17 : vector<1x32xf32> to vector<128x32xf32>
    %19 = arith.mulf %16, %18 : vector<128x32xf32>
    %c0_7 = arith.constant 0 : index
    %c0_8 = arith.constant 0 : index
    %20 = vector.load %arg3[%c0_7, %c0_8] : memref<1x32xf32, #tpu.memory_space<vmem>>, vector<1x32xf32>
    %21 = vector.broadcast %20 : vector<1x32xf32> to vector<128x32xf32>
    %22 = arith.addf %19, %21 : vector<128x32xf32>
    %c0_9 = arith.constant 0 : index
    %c0_10 = arith.constant 0 : index
    %23 = vector.load %arg4[%c0_9, %c0_10] : memref<128x32xf32, #tpu.memory_space<vmem>>, vector<128x32xf32>
    tpu.vector_store %arg4[%c0_9, %c0_10], %22 {strides = array<i32>} : memref<128x32xf32, #tpu.memory_space<vmem>>, vector<128x32xf32>,
    return
  }
  func.func @transform_0(%arg0: i32) -> (i32, i32) {
    %c0_i32 = arith.constant 0 : i32
    %c0_i32_0 = arith.constant 0 : i32
    return %arg0, %c0_i32 : i32, i32
  }
  func.func @transform_1(%arg0: i32) -> (i32, i32) {
    %c0_i32 = arith.constant 0 : i32
    %c0_i32_0 = arith.constant 0 : i32
    %c0_i32_1 = arith.constant 0 : i32
    return %c0_i32, %c0_i32_0 : i32, i32
  }
  func.func @transform_2(%arg0: i32) -> (i32, i32) {
    %c0_i32 = arith.constant 0 : i32
    %c0_i32_0 = arith.constant 0 : i32
    %c0_i32_1 = arith.constant 0 : i32
    return %c0_i32, %c0_i32_0 : i32, i32
  }
  func.func @transform_3(%arg0: i32) -> (i32, i32) {
    %c0_i32 = arith.constant 0 : i32
    %c0_i32_0 = arith.constant 0 : i32
    return %arg0, %c0_i32 : i32, i32
  }
}

</mosaic_0001>

<bundles_post_ra>
// kernel: layer_norm_channels_last.1
= control target key start
LH: loop header
LB: loop body
LE: loop exit
PB: predicated region body
PF: predicated region fallthrough
CT: control target
= control target key end

     0   :  { %8 = vsyncpa [#allocation3], 0  ;;  %s1012_s0 = inlined_call_operand.hbm [shape: f32[128,32], index: 0, kind: input, shape index: {}]   ;;  %s1013_s1 = inlined_call_operand.vmem [shape: f32[1,32], index: 1, kind: input, shape index: {}]   ;;  %s1014_s2 = inlined_call_operand.vmem [shape: f32[1,32], index: 2, kind: input, shape index: {}]   ;;  %s1015_s3 = inlined_call_operand.hbm [shape: f32[128,32], index: 3, kind: output, shape index: {}]  }
   0x1   :  { %9 = vsyncpa [#allocation4], 0  ;;  %s14_s14 = sshll.u32 %s1012_s0, 4  ;;  %s575_s15 = smov [#allocation2]   ;;  %s15_s14 = int_to_ptr.hbm [resolvable:$true] %s14_s14 }
   0x2   :  { %s16_s16 = sshll.u32 %s575_s15, 4  ;;  %s576_s17 = smov 128   ;;  %s17_s16 = int_to_ptr.vmem [resolvable:$true] %s16_s16 }
   0x3   :  { %s577_s18 = smov 8  }
   0x4   :  { %22 = dma.hbm_to_vmem [thread:$0]  %s15_s14, 2048, %s17_s16, [#allocation3], %s576_s17, %s576_s17, %s577_s18  }
   0x5   :  { %571 = dma.done.wait [#allocation3], 2048  }
   0x6   :  { %572 = vsyncadd [#allocation3], 4294965248  ;;  %vm47_vm0 = vcmask 261120   ;;  %v606_v0 = vld [vmem:[#allocation2 + $0x20] sm:$0xff]  ;;  %v33_v1 = vld [vmem:[#allocation2 + $0x10] sm:$0xff]  ;;  %v578_v32 = vmov 32.0  }
   0x7   :  { %v31_v2 = vld [vmem:[#allocation2] sm:$0xff]  ;;  %v60_v3 = vsel %vm47_vm0, %v606_v0, 0.0  ;;  %v54_v4 = vsel %vm47_vm0, %v33_v1, 0.0  ;;  %v612_v6 = vld [vmem:[#allocation2 + $0x28] sm:$0xff]  ;;  %v614_v7 = vld [vmem:[#allocation2 + $0x18] sm:$0xff]  ;;  %489 = vrcp.f32 %v578_v32  ;;  %s469_s24 = sshll.u32 %s1015_s3, 4  ;;  %s470_s24 = int_to_ptr.hbm [resolvable:$true] %s469_s24 }
   0x8   :  { %v48_v5 = vsel %vm47_vm0, %v31_v2, 0.0  ;;  %61 = vadd.xlane.f32.xlu2 %v60_v3  ;;  %55 = vadd.xlane.f32.xlu1 %v54_v4  ;;  %v616_v8 = vld [vmem:[#allocation2 + $0x8] sm:$0xff]  ;;  %v63_v9 = vsel %vm47_vm0, %v612_v6, 0.0  ;;  %v57_v10 = vsel %vm47_vm0, %v614_v7, 0.0  ;;  %v624_v12 = vld [vmem:[#allocation2 + $0x40] sm:$0xff]  ;;  %v626_v13 = vld [vmem:[#allocation2 + $0x38] sm:$0xff] }
   0x9   :  { %49 = vadd.xlane.f32.xlu0 %v48_v5  ;;  %v51_v11 = vsel %vm47_vm0, %v616_v8, 0.0  ;;  %v628_v14 = vld [vmem:[#allocation2 + $0x30] sm:$0xff]  ;;  %v72_v15 = vsel %vm47_vm0, %v624_v12, 0.0  ;;  %v69_v16 = vsel %vm47_vm0, %v626_v13, 0.0  ;;  %v636_v18 = vld [vmem:[#allocation2 + $0x58] sm:$0xff]  ;;  %v640_v20 = vld [vmem:[#allocation2 + $0x48] sm:$0xff] }
   0xa   :  { %v66_v17 = vsel %vm47_vm0, %v628_v14, 0.0  ;;  %v638_v19 = vld [vmem:[#allocation2 + $0x50] sm:$0xff]  ;;  %v81_v21 = vsel %vm47_vm0, %v636_v18, 0.0  ;;  %v75_v23 = vsel %vm47_vm0, %v640_v20, 0.0  ;;  %v650_v25 = vld [vmem:[#allocation2 + $0x68] sm:$0xff]  ;;  %v652_v26 = vld [vmem:[#allocation2 + $0x60] sm:$0xff] }
   0xb   :  { %v78_v22 = vsel %vm47_vm0, %v638_v19, 0.0  ;;  %v648_v24 = vld [vmem:[#allocation2 + $0x70] sm:$0xff]  ;;  %v87_v28 = vsel %vm47_vm0, %v650_v25, 0.0  ;;  %v84_v29 = vsel %vm47_vm0, %v652_v26, 0.0  ;;  %v660_v30 = vld [vmem:[#allocation2 + $0x78] sm:$0xff] }
   0xc   :  { %v90_v27 = vsel %vm47_vm0, %v648_v24, 0.0  ;;  %v93_v31 = vsel %vm47_vm0, %v660_v30, 0.0 }
   0xd   :  { %v490_v33 = vpop.eup %489 }
   0xe   :  { %v97_v34 = vmul.f32 32.0, %v490_v33  ;;  %vm101_vm1 = vweird.f32 %v490_v33 }
  0x10   :  { %64 = vadd.xlane.f32.xlu2 %v63_v9  ;;  %58 = vadd.xlane.f32.xlu1 %v57_v10  ;;  %v98_v35 = vsub.f32 1.0, %v97_v34 }
  0x11   :  { %52 = vadd.xlane.f32.xlu0 %v51_v11 }
  0x12   :  { %v99_v36 = vmul.f32 %v490_v33, %v98_v35 }
  0x14   :  { %v100_v37 = vadd.f32 %v490_v33, %v99_v36 }
  0x16   :  { %v664_v38 = vsel %vm101_vm1, %v490_v33, %v100_v37 }
  0x18   :  { %73 = vadd.xlane.f32.xlu2 %v72_v15  ;;  %70 = vadd.xlane.f32.xlu1 %v69_v16 }
  0x19   :  { %67 = vadd.xlane.f32.xlu0 %v66_v17 }
  0x20   :  { %82 = vadd.xlane.f32.xlu2 %v81_v21  ;;  %79 = vadd.xlane.f32.xlu1 %v78_v22 }
  0x21   :  { %76 = vadd.xlane.f32.xlu0 %v75_v23 }
  0x28   :  { %91 = vadd.xlane.f32.xlu2 %v90_v27  ;;  %88 = vadd.xlane.f32.xlu1 %v87_v28 }
  0x29   :  { %85 = vadd.xlane.f32.xlu0 %v84_v29 }
  0x31   :  { %94 = vadd.xlane.f32.xlu0 %v93_v31 }
  0x7b   :  { %v62_v39 = vpop.xlane.xlu2 %61  ;;  %v56_v40 = vpop.xlane.xlu1 %55 }
  0x7c   :  { %v105_v41 = vmul.f32 %v664_v38, %v56_v40  ;;  %v50_v42 = vpop.xlane.xlu0 %49  ;;  %v107_v58 = vmul.f32 %v664_v38, %v62_v39 }
  0x7d   :  { %v103_v43 = vmul.f32 %v664_v38, %v50_v42 }
  0x7e   :  { %v668_v44 = vsub.f32 %v33_v1, %v105_v41 }
  0x7f   :  { %v670_v45 = vsub.f32 %v31_v2, %v103_v43  ;;  %v700_v2 = vsub.f32 %v606_v0, %v107_v58 }
  0x80   :  { %v137_v46 = vmul.f32 %v668_v44, %v668_v44 }
  0x81   :  { %v135_v47 = vmul.f32 %v670_v45, %v670_v45  ;;  %v139_v11 = vmul.f32 %v700_v2, %v700_v2 }
  0x82   :  { %v157_v48 = vsel %vm47_vm0, %v137_v46, 0.0 }
  0x83   :  { %v65_v49 = vpop.xlane.xlu2 %64  ;;  %v59_v50 = vpop.xlane.xlu1 %58  ;;  %158 = vadd.xlane.f32.xlu0 %v157_v48  ;;  %v151_v51 = vsel %vm47_vm0, %v135_v47, 0.0 }
  0x84   :  { %v108_v52 = vmul.f32 %v664_v38, %v65_v49  ;;  %v106_v53 = vmul.f32 %v664_v38, %v59_v50  ;;  %152 = vadd.xlane.f32.xlu1 %v151_v51  ;;  %v53_v54 = vpop.xlane.xlu0 %52 }
  0x85   :  { %v104_v55 = vmul.f32 %v664_v38, %v53_v54 }
  0x86   :  { %v682_v56 = vsub.f32 %v612_v6, %v108_v52  ;;  %v685_v57 = vsub.f32 %v614_v7, %v106_v53 }
  0x87   :  { %v689_v59 = vsub.f32 %v616_v8, %v104_v55 }
  0x88   :  { %v140_v60 = vmul.f32 %v682_v56, %v682_v56  ;;  %v138_v61 = vmul.f32 %v685_v57, %v685_v57 }
  0x89   :  { %v136_v62 = vmul.f32 %v689_v59, %v689_v59 }
  0x8a   :  { %v166_v63 = vsel %vm47_vm0, %v140_v60, 0.0  ;;  %v160_v1 = vsel %vm47_vm0, %v138_v61, 0.0 }
  0x8b   :  { %v74_v3 = vpop.xlane.xlu2 %73  ;;  %167 = vadd.xlane.f32.xlu0 %v166_v63  ;;  %v154_v4 = vsel %vm47_vm0, %v136_v62, 0.0  ;;  %v71_v5 = vpop.xlane.xlu1 %70 }
  0x8c   :  { %v111_v6 = vmul.f32 %v664_v38, %v74_v3  ;;  %161 = vadd.xlane.f32.xlu1 %v160_v1  ;;  %155 = vadd.xlane.f32.xlu2 %v154_v4  ;;  %v68_v7 = vpop.xlane.xlu0 %67  ;;  %v110_v9 = vmul.f32 %v664_v38, %v71_v5 }
  0x8d   :  { %v109_v8 = vmul.f32 %v664_v38, %v68_v7 }
  0x8e   :  { %v707_v10 = vsub.f32 %v624_v12, %v111_v6  ;;  %v717_v16 = vsub.f32 %v626_v13, %v110_v9  ;;  %v163_v12 = vsel %vm47_vm0, %v139_v11, 0.0 }
  0x8f   :  { %v710_v0 = vsub.f32 %v628_v14, %v109_v8 }
  0x90   :  { %v143_v15 = vmul.f32 %v707_v10, %v707_v10  ;;  %v142_v31 = vmul.f32 %v717_v16, %v717_v16 }
  0x91   :  { %v141_v17 = vmul.f32 %v710_v0, %v710_v0 }
  0x92   :  { %v175_v21 = vsel %vm47_vm0, %v143_v15, 0.0  ;;  %v172_v36 = vsel %vm47_vm0, %v142_v31, 0.0 }
  0x93   :  { %v83_v22 = vpop.xlane.xlu2 %82  ;;  %176 = vadd.xlane.f32.xlu0 %v175_v21  ;;  %v169_v14 = vsel %vm47_vm0, %v141_v17, 0.0  ;;  %v80_v23 = vpop.xlane.xlu1 %79 }
  0x94   :  { %v114_v27 = vmul.f32 %v664_v38, %v83_v22  ;;  %164 = vadd.xlane.f32.xlu2 %v163_v12  ;;  %170 = vadd.xlane.f32.xlu1 %v169_v14  ;;  %v77_v28 = vpop.xlane.xlu0 %76  ;;  %v113_v29 = vmul.f32 %v664_v38, %v80_v23 }
  0x95   :  { %v112_v13 = vmul.f32 %v664_v38, %v77_v28 }
  0x96   :  { %v730_v32 = vsub.f32 %v636_v18, %v114_v27  ;;  %v738_v35 = vsub.f32 %v638_v19, %v113_v29 }
  0x97   :  { %v733_v33 = vsub.f32 %v640_v20, %v112_v13 }
  0x98   :  { %v146_v34 = vmul.f32 %v730_v32, %v730_v32  ;;  %v145_v46 = vmul.f32 %v738_v35, %v738_v35 }
  0x99   :  { %v144_v37 = vmul.f32 %v733_v33, %v733_v33 }
  0x9a   :  { %v184_v39 = vsel %vm47_vm0, %v146_v34, 0.0  ;;  %v181_v51 = vsel %vm47_vm0, %v145_v46, 0.0 }
  0x9b   :  { %v92_v40 = vpop.xlane.xlu2 %91  ;;  %185 = vadd.xlane.f32.xlu0 %v184_v39  ;;  %v178_v18 = vsel %vm47_vm0, %v144_v37, 0.0  ;;  %v89_v41 = vpop.xlane.xlu1 %88 }
  0x9c   :  { %v117_v20 = vmul.f32 %v664_v38, %v92_v40  ;;  %173 = vadd.xlane.f32.xlu2 %v172_v36  ;;  %179 = vadd.xlane.f32.xlu1 %v178_v18  ;;  %v86_v42 = vpop.xlane.xlu0 %85  ;;  %v116_v43 = vmul.f32 %v664_v38, %v89_v41 }
  0x9d   :  { %v115_v19 = vmul.f32 %v664_v38, %v86_v42 }
  0x9e   :  { %v751_v47 = vsub.f32 %v648_v24, %v117_v20  ;;  %v759_v50 = vsub.f32 %v650_v25, %v116_v43 }
  0x9f   :  { %v754_v48 = vsub.f32 %v652_v26, %v115_v19 }
  0xa0   :  { %v149_v49 = vmul.f32 %v751_v47, %v751_v47  ;;  %v148_v55 = vmul.f32 %v759_v50, %v759_v50 }
  0xa1   :  { %v147_v52 = vmul.f32 %v754_v48, %v754_v48 }
  0xa2   :  { %v193_v53 = vsel %vm47_vm0, %v149_v49, 0.0  ;;  %v190_v58 = vsel %vm47_vm0, %v148_v55, 0.0 }
  0xa3   :  { %194 = vadd.xlane.f32.xlu0 %v193_v53  ;;  %v187_v24 = vsel %vm47_vm0, %v147_v52, 0.0 }
  0xa4   :  { %182 = vadd.xlane.f32.xlu2 %v181_v51  ;;  %188 = vadd.xlane.f32.xlu1 %v187_v24  ;;  %v95_v26 = vpop.xlane.xlu0 %94  ;;  %v806_v51 = vld [vmem:[%s1013_s1] ss:$0 sm:$0xff] }
  0xa5   :  { %v118_v54 = vmul.f32 %v664_v38, %v95_v26 }
  0xa7   :  { %v770_v25 = vsub.f32 %v660_v30, %v118_v54 }
  0xa9   :  { %v150_v60 = vmul.f32 %v770_v25, %v770_v25 }
  0xab   :  { %v196_v61 = vsel %vm47_vm0, %v150_v60, 0.0  ;;  %v821_v60 = vld [vmem:[%s1014_s2] ss:$0 sm:$0xff]  ;;  %s579_s2 = smov [#allocation5]  }
  0xac   :  { %191 = vadd.xlane.f32.xlu2 %v190_v58  ;;  %197 = vadd.xlane.f32.xlu1 %v196_v61  ;;  %s467_s21 = sshll.u32 %s579_s2, 4  ;;  %s468_s21 = int_to_ptr.vmem [resolvable:$true] %s467_s21 }
  0xf6   :  { %v159_v62 = vpop.xlane.xlu0 %158 }
  0xf7   :  { %v153_v63 = vpop.xlane.xlu1 %152  ;;  %v201_v1 = vmul.f32 %v159_v62, %v664_v38 }
  0xf8   :  { %v199_v3 = vmul.f32 %v153_v63, %v664_v38 }
  0xf9   :  { %v217_v4 = vadd.f32 1e-06, %v201_v1 }
  0xfa   :  { %v215_v5 = vadd.f32 1e-06, %v199_v3 }
  0xfb   :  { %491 = vrsqrt.f32 %v217_v4  ;;  %vm257_vm4 = vweird.f32 %v217_v4 }
  0xfc   :  { %493 = vrsqrt.f32 %v215_v5  ;;  %vm237_vm5 = vweird.f32 %v215_v5 }
  0xfe   :  { %v168_v30 = vpop.xlane.xlu0 %167 }
  0xff   :  { %v162_v6 = vpop.xlane.xlu1 %161  ;;  %v156_v7 = vpop.xlane.xlu2 %155  ;;  %v204_v8 = vmul.f32 %v168_v30, %v664_v38 }
 0x100   :  { %v202_v9 = vmul.f32 %v162_v6, %v664_v38  ;;  %v200_v11 = vmul.f32 %v156_v7, %v664_v38 }
 0x101   :  { %v492_v15 = vpop.eup %491  ;;  %v781_v17 = vadd.f32 1e-06, %v204_v8 }
 0x102   :  { %v494_v21 = vpop.eup %493  ;;  %v252_v22 = vmul.f32 %v492_v15, %v217_v4  ;;  %v783_v12 = vadd.f32 1e-06, %v202_v9  ;;  %v785_v14 = vadd.f32 1e-06, %v200_v11  ;;  %vm258_vm2 = vweird.f32 %v492_v15 }
 0x103   :  { %v232_v23 = vmul.f32 %v494_v21, %v215_v5  ;;  %495 = vrsqrt.f32 %v781_v17  ;;  %vm238_vm3 = vweird.f32 %v494_v21  ;;  %vm259_vm6 = vmor %vm257_vm4, %vm258_vm2  ;;  %vm287_vm8 = vweird.f32 %v781_v17 }
 0x104   :  { %v253_v27 = vmul.f32 %v492_v15, %v252_v22  ;;  %497 = vrsqrt.f32 %v783_v12  ;;  %vm239_vm7 = vmor %vm237_vm5, %vm238_vm3  ;;  %vm267_vm12 = vweird.f32 %v783_v12  ;;  %vm247_vm13 = vweird.f32 %v785_v14 }
 0x105   :  { %v233_v28 = vmul.f32 %v494_v21, %v232_v23  ;;  %499 = vrsqrt.f32 %v785_v14 }
 0x106   :  { %v254_v13 = vmul.f32 0.5, %v253_v27  ;;  %v177_v29 = vpop.xlane.xlu0 %176 }
 0x107   :  { %v234_v31 = vmul.f32 0.5, %v233_v28  ;;  %v165_v34 = vpop.xlane.xlu2 %164  ;;  %v171_v36 = vpop.xlane.xlu1 %170  ;;  %v207_v18 = vmul.f32 %v177_v29, %v664_v38 }
 0x108   :  { %v255_v37 = vsub.f32 1.5, %v254_v13  ;;  %v203_v39 = vmul.f32 %v165_v34, %v664_v38  ;;  %v205_v40 = vmul.f32 %v171_v36, %v664_v38 }
 0x109   :  { %v793_v41 = vpop.eup %495  ;;  %v235_v20 = vsub.f32 1.5, %v234_v31  ;;  %v816_v58 = vadd.f32 1e-06, %v207_v18 }
 0x10a   :  { %v795_v42 = vpop.eup %497  ;;  %v256_v19 = vmul.f32 %v492_v15, %v255_v37  ;;  %v282_v43 = vmul.f32 %v793_v41, %v781_v17  ;;  %v799_v46 = vadd.f32 1e-06, %v203_v39  ;;  %v811_v24 = vadd.f32 1e-06, %v205_v40 }
 0x10b   :  { %v801_v49 = vpop.eup %499  ;;  %v236_v52 = vmul.f32 %v494_v21, %v235_v20  ;;  %v262_v53 = vmul.f32 %v795_v42, %v783_v12  ;;  %vm288_vm9 = vweird.f32 %v793_v41  ;;  %vm268_vm10 = vweird.f32 %v795_v42 }
 0x10c   :  { %v260_v26 = vsel %vm259_vm6, %v492_v15, %v256_v19  ;;  %v242_v54 = vmul.f32 %v801_v49, %v785_v14  ;;  %v283_v55 = vmul.f32 %v793_v41, %v282_v43  ;;  %501 = vrsqrt.f32 %v799_v46  ;;  %vm289_vm14 = vmor %vm287_vm8, %vm288_vm9 }
 0x10d   :  { %v240_v61 = vsel %vm239_vm7, %v494_v21, %v236_v52  ;;  %v393_v62 = vmul.f32 %v260_v26, %v668_v44  ;;  %v263_v63 = vmul.f32 %v795_v42, %v262_v53  ;;  %503 = vrsqrt.f32 %v811_v24  ;;  %vm269_vm15 = vmor %vm267_vm12, %vm268_vm10 }
 0x10e   :  { %v391_v1 = vmul.f32 %v240_v61, %v670_v45  ;;  %v243_v3 = vmul.f32 %v801_v49, %v242_v54  ;;  %v284_v4 = vmul.f32 0.5, %v283_v55  ;;  %505 = vrsqrt.f32 %v816_v58  ;;  %v186_v27 = vpop.xlane.xlu0 %185 }
 0x10f   :  { %v413_v5 = vmul.f32 %v806_v51, %v393_v62  ;;  %v264_v30 = vmul.f32 0.5, %v263_v63  ;;  %v174_v6 = vpop.xlane.xlu2 %173  ;;  %v180_v15 = vpop.xlane.xlu1 %179  ;;  %vm248_vm11 = vweird.f32 %v801_v49  ;;  %vm277_vm1 = vweird.f32 %v799_v46 }
 0x110   :  { %v411_v44 = vmul.f32 %v806_v51, %v391_v1  ;;  %v244_v7 = vmul.f32 0.5, %v243_v3  ;;  %v285_v8 = vsub.f32 1.5, %v284_v4  ;;  %v206_v11 = vmul.f32 %v174_v6, %v664_v38  ;;  %vm249_vm2 = vmor %vm247_vm13, %vm248_vm11 }
 0x111   :  { %v433_v45 = vadd.f32 %v821_v60, %v413_v5  ;;  %v265_v9 = vsub.f32 1.5, %v264_v30  ;;  %v208_v14 = vmul.f32 %v180_v15, %v664_v38  ;;  %v210_v39 = vmul.f32 %v186_v27, %v664_v38 }
 0x112   :  { %v431_v21 = vadd.f32 %v821_v60, %v411_v44  ;;  %v245_v22 = vsub.f32 1.5, %v244_v7  ;;  %v286_v23 = vmul.f32 %v793_v41, %v285_v8  ;;  %v840_v28 = vpop.eup %501  ;;  %v850_v29 = vadd.f32 1e-06, %v206_v11 }
 0x113   :  { %449 = vst.msk [vmem:[#allocation5 + $0x10] sm:$0xff] %vm47_vm0, %v433_v45  ;;  %v266_v13 = vmul.f32 %v795_v42, %v265_v9  ;;  %v272_v12 = vmul.f32 %v840_v28, %v799_v46  ;;  %v861_v17 = vpop.eup %503  ;;  %vm297_vm3 = vweird.f32 %v811_v24  ;;  %vm278_vm4 = vweird.f32 %v840_v28 }
 0x114   :  { %447 = vst.msk [vmem:[#allocation5] sm:$0xff] %vm47_vm0, %v431_v21  ;;  %v246_v31 = vmul.f32 %v801_v49, %v245_v22  ;;  %v290_v34 = vsel %vm289_vm14, %v793_v41, %v286_v23  ;;  %507 = vrsqrt.f32 %v850_v29  ;;  %v506_v40 = vpop.eup %505  ;;  %v292_v19 = vmul.f32 %v861_v17, %v811_v24  ;;  %vm279_vm7 = vmor %vm277_vm1, %vm278_vm4 }
 0x115   :  { %v270_v36 = vsel %vm269_vm15, %v795_v42, %v266_v13  ;;  %v396_v37 = vmul.f32 %v290_v34, %v682_v56  ;;  %v273_v20 = vmul.f32 %v840_v28, %v272_v12  ;;  %v312_v56 = vmul.f32 %v506_v40, %v816_v58 }
 0x116   :  { %v394_v18 = vmul.f32 %v270_v36, %v685_v57  ;;  %v250_v41 = vsel %vm249_vm2, %v801_v49, %v246_v31  ;;  %v293_v57 = vmul.f32 %v861_v17, %v292_v19  ;;  %v886_v1 = vadd.f32 1e-06, %v210_v39  ;;  %v195_v9 = vpop.xlane.xlu0 %194 }
 0x117   :  { %v392_v42 = vmul.f32 %v250_v41, %v689_v59  ;;  %v416_v43 = vmul.f32 %v806_v51, %v396_v37  ;;  %v183_v52 = vpop.xlane.xlu2 %182  ;;  %v274_v26 = vmul.f32 0.5, %v273_v20  ;;  %v313_v55 = vmul.f32 %v506_v40, %v312_v56  ;;  %v189_v30 = vpop.xlane.xlu1 %188 }
 0x118   :  { %v414_v53 = vmul.f32 %v806_v51, %v394_v18  ;;  %v883_v59 = vadd.f32 1e-06, %v208_v14  ;;  %v294_v63 = vmul.f32 0.5, %v293_v57  ;;  %vm317_vm5 = vweird.f32 %v816_v58 }
 0x119   :  { %v412_v49 = vmul.f32 %v806_v51, %v392_v42  ;;  %v436_v54 = vadd.f32 %v821_v60, %v416_v43  ;;  %v275_v62 = vsub.f32 1.5, %v274_v26  ;;  %v314_v5 = vmul.f32 0.5, %v313_v55 }
 0x11a   :  { %v434_v61 = vadd.f32 %v821_v60, %v414_v53  ;;  %v888_v3 = vpop.eup %507  ;;  %509 = vrsqrt.f32 %v883_v59  ;;  %v295_v44 = vsub.f32 1.5, %v294_v63  ;;  %vm298_vm6 = vweird.f32 %v861_v17 }
 0x11b   :  { %v432_v4 = vadd.f32 %v821_v60, %v412_v49  ;;  %452 = vst.msk [vmem:[#allocation5 + $0x28] sm:$0xff] %vm47_vm0, %v436_v54  ;;  %v276_v6 = vmul.f32 %v840_v28, %v275_v62  ;;  %v302_v7 = vmul.f32 %v888_v3, %v850_v29  ;;  %v315_v8 = vsub.f32 1.5, %v314_v5  ;;  %vm299_vm9 = vmor %vm297_vm3, %vm298_vm6 }
 0x11c   :  { %450 = vst.msk [vmem:[#allocation5 + $0x18] sm:$0xff] %vm47_vm0, %v434_v61  ;;  %vm318_vm8 = vweird.f32 %v506_v40  ;;  %511 = vrsqrt.f32 %v886_v1  ;;  %v209_v45 = vmul.f32 %v183_v52, %v664_v38  ;;  %v296_v15 = vmul.f32 %v861_v17, %v295_v44 }
 0x11d   :  { %448 = vst.msk [vmem:[#allocation5 + $0x8] sm:$0xff] %vm47_vm0, %v432_v4  ;;  %v280_v11 = vsel %vm279_vm7, %v840_v28, %v276_v6  ;;  %v303_v21 = vmul.f32 %v888_v3, %v302_v7  ;;  %v211_v22 = vmul.f32 %v189_v30, %v664_v38  ;;  %v316_v46 = vmul.f32 %v506_v40, %v315_v8  ;;  %vm319_vm11 = vmor %vm317_vm5, %vm318_vm8 }
 0x11e   :  { %v395_v23 = vmul.f32 %v280_v11, %v700_v2  ;;  %vm307_vm10 = vweird.f32 %v850_v29  ;;  %v914_v27 = vadd.f32 1e-06, %v209_v45  ;;  %v300_v13 = vsel %vm299_vm9, %v861_v17, %v296_v15 }
 0x11f   :  { %v304_v28 = vmul.f32 0.5, %v303_v21  ;;  %v919_v31 = vadd.f32 1e-06, %v211_v22  ;;  %v213_v34 = vmul.f32 %v195_v9, %v664_v38  ;;  %v192_v12 = vpop.xlane.xlu2 %191  ;;  %v397_v14 = vmul.f32 %v300_v13, %v710_v0  ;;  %v198_v57 = vpop.xlane.xlu1 %197 }
 0x120   :  { %v510_v2 = vpop.eup %509  ;;  %v415_v24 = vmul.f32 %v806_v51, %v395_v23  ;;  %v320_v36 = vsel %vm319_vm11, %v506_v40, %v316_v46  ;;  %513 = vrsqrt.f32 %v914_v27  ;;  %vm308_vm12 = vweird.f32 %v888_v3 }
 0x121   :  { %v399_v37 = vmul.f32 %v320_v36, %v707_v10  ;;  %v305_v17 = vsub.f32 1.5, %v304_v28  ;;  %v322_v58 = vmul.f32 %v510_v2, %v883_v59  ;;  %v417_v41 = vmul.f32 %v806_v51, %v397_v14  ;;  %vm309_vm13 = vmor %vm307_vm10, %vm308_vm12 }
 0x122   :  { %v512_v39 = vpop.eup %511  ;;  %v435_v18 = vadd.f32 %v821_v60, %v415_v24  ;;  %515 = vrsqrt.f32 %v919_v31  ;;  %v212_v20 = vmul.f32 %v192_v12, %v664_v38  ;;  %vm327_vm14 = vweird.f32 %v883_v59 }
 0x123   :  { %v419_v0 = vmul.f32 %v806_v51, %v399_v37  ;;  %v306_v40 = vmul.f32 %v888_v3, %v305_v17  ;;  %v323_v19 = vmul.f32 %v510_v2, %v322_v58  ;;  %v342_v10 = vmul.f32 %v512_v39, %v886_v1 }
 0x124   :  { %451 = vst.msk [vmem:[#allocation5 + $0x20] sm:$0xff] %vm47_vm0, %v435_v18  ;;  %v437_v42 = vadd.f32 %v821_v60, %v417_v41  ;;  %v940_v43 = vadd.f32 1e-06, %v213_v34  ;;  %vm347_vm15 = vweird.f32 %v886_v1  ;;  %v948_v29 = vadd.f32 1e-06, %v212_v20 }
 0x125   :  { %v439_v56 = vadd.f32 %v821_v60, %v419_v0  ;;  %v310_v52 = vsel %vm309_vm13, %v888_v3, %v306_v40  ;;  %v324_v53 = vmul.f32 0.5, %v323_v19  ;;  %v343_v26 = vmul.f32 %v512_v39, %v342_v10 }
 0x126   :  { %v514_v49 = vpop.eup %513  ;;  %453 = vst.msk [vmem:[#allocation5 + $0x30] sm:$0xff] %vm47_vm0, %v437_v42  ;;  %v398_v54 = vmul.f32 %v310_v52, %v717_v16  ;;  %517 = vrsqrt.f32 %v940_v43  ;;  %vm328_vm1 = vweird.f32 %v510_v2  ;;  %vm348_vm2 = vweird.f32 %v512_v39 }
 0x127   :  { %455 = vst.msk [vmem:[#allocation5 + $0x40] sm:$0xff] %vm47_vm0, %v439_v56  ;;  %v325_v55 = vsub.f32 1.5, %v324_v53  ;;  %v344_v61 = vmul.f32 0.5, %v343_v26  ;;  %v332_v62 = vmul.f32 %v514_v49, %v914_v27  ;;  %519 = vrsqrt.f32 %v948_v29  ;;  %vm329_vm3 = vmor %vm327_vm14, %vm328_vm1 }
 0x128   :  { %v516_v63 = vpop.eup %515  ;;  %v418_v3 = vmul.f32 %v806_v51, %v398_v54  ;;  %v214_v16 = vmul.f32 %v198_v57, %v664_v38  ;;  %vm349_vm4 = vmor %vm347_vm15, %vm348_vm2  ;;  %vm338_vm5 = vweird.f32 %v514_v49  ;;  %vm337_vm6 = vweird.f32 %v914_v27 }
 0x129   :  { %v326_v4 = vmul.f32 %v510_v2, %v325_v55  ;;  %v345_v5 = vsub.f32 1.5, %v344_v61  ;;  %v333_v30 = vmul.f32 %v514_v49, %v332_v62  ;;  %v352_v6 = vmul.f32 %v516_v63, %v919_v31  ;;  %vm339_vm8 = vmor %vm337_vm6, %vm338_vm5 }
 0x12a   :  { %v438_v44 = vadd.f32 %v821_v60, %v418_v3  ;;  %v959_v7 = vadd.f32 1e-06, %v214_v16  ;;  %vm358_vm7 = vweird.f32 %v516_v63  ;;  %vm357_vm9 = vweird.f32 %v919_v31 }
 0x12b   :  { %v330_v8 = vsel %vm329_vm3, %v510_v2, %v326_v4  ;;  %v346_v45 = vmul.f32 %v512_v39, %v345_v5  ;;  %v334_v9 = vmul.f32 0.5, %v333_v30  ;;  %v353_v11 = vmul.f32 %v516_v63, %v352_v6  ;;  %vm359_vm10 = vmor %vm357_vm9, %vm358_vm7 }
 0x12c   :  { %v518_v15 = vpop.eup %517  ;;  %454 = vst.msk [vmem:[#allocation5 + $0x38] sm:$0xff] %vm47_vm0, %v438_v44  ;;  %v400_v38 = vmul.f32 %v330_v8, %v733_v33  ;;  %521 = vrsqrt.f32 %v959_v7  ;;  %vm377_vm11 = vweird.f32 %v940_v43  ;;  %vm367_vm15 = vweird.f32 %v948_v29 }
 0x12d   :  { %v350_v59 = vsel %vm349_vm4, %v512_v39, %v346_v45  ;;  %v335_v21 = vsub.f32 1.5, %v334_v9  ;;  %v354_v22 = vmul.f32 0.5, %v353_v11  ;;  %v372_v23 = vmul.f32 %v518_v15, %v940_v43  ;;  %v520_v46 = vpop.eup %519 }
 0x12e   :  { %v420_v13 = vmul.f32 %v806_v51, %v400_v38  ;;  %v402_v28 = vmul.f32 %v350_v59, %v730_v32  ;;  %v362_v12 = vmul.f32 %v520_v46, %v948_v29  ;;  %vm378_vm12 = vweird.f32 %v518_v15 }
 0x12f   :  { %v336_v33 = vmul.f32 %v514_v49, %v335_v21  ;;  %v355_v34 = vsub.f32 1.5, %v354_v22  ;;  %v373_v1 = vmul.f32 %v518_v15, %v372_v23  ;;  %vm368_vm13 = vweird.f32 %v520_v46  ;;  %vm379_vm14 = vmor %vm377_vm11, %vm378_vm12 }
 0x130   :  { %v440_v2 = vadd.f32 %v821_v60, %v420_v13  ;;  %v422_v24 = vmul.f32 %v806_v51, %v402_v28  ;;  %v363_v32 = vmul.f32 %v520_v46, %v362_v12  ;;  %vm369_vm1 = vmor %vm367_vm15, %vm368_vm13  ;;  %vm387_vm3 = vweird.f32 %v959_v7 }
 0x131   :  { %v340_v14 = vsel %vm339_vm8, %v514_v49, %v336_v33  ;;  %v356_v36 = vmul.f32 %v516_v63, %v355_v34  ;;  %v374_v37 = vmul.f32 0.5, %v373_v1 }
 0x132   :  { %v522_v17 = vpop.eup %521  ;;  %456 = vst.msk [vmem:[#allocation5 + $0x48] sm:$0xff] %vm47_vm0, %v440_v2  ;;  %v442_v27 = vadd.f32 %v821_v60, %v422_v24  ;;  %v401_v58 = vmul.f32 %v340_v14, %v738_v35  ;;  %v364_v41 = vmul.f32 0.5, %v363_v32 }
 0x133   :  { %v360_v39 = vsel %vm359_vm10, %v516_v63, %v356_v36  ;;  %v375_v18 = vsub.f32 1.5, %v374_v37  ;;  %v382_v31 = vmul.f32 %v522_v17, %v959_v7  ;;  %vm388_vm2 = vweird.f32 %v522_v17 }
 0x134   :  { %458 = vst.msk [vmem:[#allocation5 + $0x58] sm:$0xff] %vm47_vm0, %v442_v27  ;;  %v421_v20 = vmul.f32 %v806_v51, %v401_v58  ;;  %v403_v0 = vmul.f32 %v360_v39, %v754_v48  ;;  %v365_v19 = vsub.f32 1.5, %v364_v41  ;;  %vm389_vm4 = vmor %vm387_vm3, %vm388_vm2 }
 0x135   :  { %v376_v40 = vmul.f32 %v518_v15, %v375_v18  ;;  %v383_v35 = vmul.f32 %v522_v17, %v382_v31 }
 0x136   :  { %v441_v10 = vadd.f32 %v821_v60, %v421_v20  ;;  %v423_v42 = vmul.f32 %v806_v51, %v403_v0  ;;  %v366_v52 = vmul.f32 %v520_v46, %v365_v19 }
 0x137   :  { %v380_v56 = vsel %vm379_vm14, %v518_v15, %v376_v40  ;;  %v384_v53 = vmul.f32 0.5, %v383_v35 }
 0x138   :  { %457 = vst.msk [vmem:[#allocation5 + $0x50] sm:$0xff] %vm47_vm0, %v441_v10  ;;  %v443_v48 = vadd.f32 %v821_v60, %v423_v42  ;;  %v405_v26 = vmul.f32 %v380_v56, %v751_v47  ;;  %v370_v57 = vsel %vm369_vm1, %v520_v46, %v366_v52 }
 0x139   :  { %v385_v49 = vsub.f32 1.5, %v384_v53  ;;  %v404_v54 = vmul.f32 %v370_v57, %v759_v50 }
 0x13a   :  { %459 = vst.msk [vmem:[#allocation5 + $0x60] sm:$0xff] %vm47_vm0, %v443_v48  ;;  %v425_v43 = vmul.f32 %v806_v51, %v405_v26 }
 0x13b   :  { %v386_v55 = vmul.f32 %v522_v17, %v385_v49  ;;  %v424_v61 = vmul.f32 %v806_v51, %v404_v54 }
 0x13c   :  { %v445_v29 = vadd.f32 %v821_v60, %v425_v43 }
 0x13d   :  { %v390_v62 = vsel %vm389_vm4, %v522_v17, %v386_v55  ;;  %v444_v47 = vadd.f32 %v821_v60, %v424_v61 }
 0x13e   :  { %461 = vst.msk [vmem:[#allocation5 + $0x70] sm:$0xff] %vm47_vm0, %v445_v29  ;;  %v406_v63 = vmul.f32 %v390_v62, %v770_v25 }
 0x13f   :  { %460 = vst.msk [vmem:[#allocation5 + $0x68] sm:$0xff] %vm47_vm0, %v444_v47 }
 0x140   :  { %v426_v50 = vmul.f32 %v806_v51, %v406_v63 }
 0x142   :  { %v446_v3 = vadd.f32 %v821_v60, %v426_v50 }
 0x144   :  { %462 = vst.msk [vmem:[#allocation5 + $0x78] sm:$0xff] %vm47_vm0, %v446_v3 }
 0x145   :  { %475 = dma.vmem_to_hbm [thread:$0]  %s468_s21, 2048, %s470_s24, [#allocation4], %s576_s17, %s576_s17, %s577_s18  }
 0x146   :  { %573 = dma.done.wait [#allocation4], 2048  }
 0x147   :  { %574 = vsyncadd [#allocation4], 4294965248 }
 0x148   :  { %480 = vsyncpa [#allocation3], 1 }
 0x149   :  { %481 = vsyncpa [#allocation4], 1 }

</bundles_post_ra>
